<compile_context>
chip_gen: v7x
topology: tpu7x:2x2x1
jax: 0.10.0
libtpu: 0.0.40
codegen_flags: <defaults>
</compile_context>

<pallas_src>
import jax
import jax.numpy as jnp
from jax.experimental import pallas as pl
from jax.experimental.pallas import tpu as pltpu

# ~2 MiB blocks: ~85% of HBM roofline for a tiled copy; 2 pipeline bufs x
# (in + out) x 2 MiB = 8 MiB, well under v5e's 16 MiB default scoped VMEM and
# v7x's 32 MiB default / 64 MiB physical VMEM.
_TARGET_BLOCK_BYTES = 2 * 1024 * 1024


def _copy_kernel(x_ref, o_ref):
    # Straight ref-to-ref assignment: the DMA (HBM bandwidth), not the store
    # slot, is the limiter.
    o_ref[...] = x_ref[...]


def _min_sublanes(itemsize: int) -> int:
    """Native sublane tile: 8 for 4-byte, 16 for 2-byte, 32 for 1-byte dtypes."""
    return max(8, 32 // max(1, itemsize))


def _lane_dense_factorization(total: int, min_sub: int):
    """Factor `total` into (rows, cols): cols a multiple of 128 (lane-dense,
    unmasked vst) and rows a multiple of the dtype's native sublane tile.
    First pass prefers rows >= 2*min_sub so the grid has >= 2 blocks (v7x has
    two TensorCores sharing HBM bandwidth). Returns None if no clean split."""
    for min_rows in (2 * min_sub, min_sub):
        for cols in (2048, 1024, 512, 256, 128):
            if total % cols == 0:
                rows = total // cols
                if rows % min_sub == 0 and rows >= min_rows:
                    return rows, cols
    return None


def _pick_tile_rows(rows: int, cols: int, itemsize: int, min_sub: int) -> int:
    """Largest exact divisor of `rows` that is a multiple of `min_sub` and keeps
    the block at/under ~2 MiB. Exact divisor -> no masked edge block. When the
    array allows it, cap at rows/2 so at least two grid blocks exist."""
    budget_rows = max(
        min_sub, (_TARGET_BLOCK_BYTES // (cols * itemsize)) // min_sub * min_sub
    )
    if rows >= 2 * min_sub:
        budget_rows = min(budget_rows, (rows // 2) // min_sub * min_sub)
    cap = min(budget_rows, rows)
    for cand in range(cap, min_sub - 1, -min_sub):
        if rows % cand == 0:
            return cand
    return min_sub  # rows is a multiple of min_sub by construction


def _pallas_identity_copy(x: jax.Array) -> jax.Array:
    """Identity via a lane-dense, aliased Pallas copy kernel (debug path)."""
    shape = x.shape
    dtype = x.dtype
    itemsize = jnp.dtype(dtype).itemsize
    total = 1
    for s in shape:
        total *= int(s)
    min_sub = _min_sublanes(itemsize)

    fac = _lane_dense_factorization(total, min_sub)
    if total == 0 or fac is None:
        # No lane/sublane-friendly factorization: a degenerate (1, total) block
        # would be unpipelined, mostly-masked, and can overflow scoped VMEM for
        # large images. The op is a pure identity, so pass through exactly.
        return x

    rows, cols = fac
    tile_rows = _pick_tile_rows(rows, cols, itemsize, min_sub)
    grid = (rows // tile_rows,)  # exact divisor -> no masked vst.msk edge block

    x2d = x.reshape(rows, cols)
    out2d = pl.pallas_call(
        _copy_kernel,
        out_shape=jax.ShapeDtypeStruct((rows, cols), dtype),
        grid_spec=pltpu.PrefetchScalarGridSpec(
            num_scalar_prefetch=0,
            grid=grid,
            in_specs=[pl.BlockSpec((tile_rows, cols), lambda i: (i, 0))],
            out_specs=pl.BlockSpec((tile_rows, cols), lambda i: (i, 0)),
        ),
        # Alias output onto the input buffer; honored because the jit wrapper
        # below donates the argument.
        input_output_aliases={0: 0},
        compiler_params=pltpu.CompilerParams(
            # Lets v7x shard the copy across its two TensorCores; no-op on
            # v5e/v6e.
            dimension_semantics=("parallel",),
        ),
        cost_estimate=pl.CostEstimate(
            flops=0, transcendentals=0, bytes_accessed=2 * total * itemsize
        ),
    )(x2d)
    return out2d.reshape(shape)


# jit + donated input: without donation the eager caller owns a live buffer and
# XLA inserts a defensive HBM->HBM copy before the aliased kernel, defeating
# input_output_aliases. NOTE: this consumes (invalidates) the passed-in image.
_pallas_identity_copy_jit = jax.jit(_pallas_identity_copy, donate_argnums=0)


class MosaicPallas:
    """JAX/Pallas equivalent of the PyTorch `Mosaic` transform.

    The reference forward() is the identity on (image, target), so the default
    path returns the inputs untouched (zero kernels, zero HBM traffic).
    `use_pallas_copy=True` routes the image through the lane-dense aliased
    Pallas copy kernel for debugging / pipeline verification; that path
    donates the image buffer.
    """

    def __init__(self, size: int = 300, use_pallas_copy: bool = False):
        self.size = size  # kept for parity with the PyTorch module; unused.
        self.use_pallas_copy = use_pallas_copy

    def __call__(self, image: jax.Array, target: dict) -> tuple:
        if self.use_pallas_copy:
            image = _pallas_identity_copy_jit(image)
        # Target dict: pure identity — per-array kernels for (2,3,4)/(2,3)
        # tensors would be pure launch overhead with >96% masked lanes.
        return image, dict(target)


if __name__ == "__main__":
    key = jax.random.PRNGKey(0)
    k_img, k_box = jax.random.split(key)

    # Small NCHW image, consistent with an SSD-style detection pipeline input.
    image = jax.random.normal(k_img, (2, 4, 16, 16), dtype=jnp.float32)
    target = {
        "boxes": jax.random.uniform(k_box, (2, 3, 4), dtype=jnp.float32),
        "labels": jnp.arange(6, dtype=jnp.int32).reshape(2, 3),
    }

    # 1) Default (production) path: pure identity, no kernel launched.
    mosaic = MosaicPallas(size=300)
    img_out, tgt_out = mosaic(image, target)
    jax.block_until_ready(img_out)
    assert img_out.shape == image.shape and img_out.dtype == image.dtype
    assert bool(jnp.all(img_out == image))
    assert bool(jnp.all(tgt_out["boxes"] == target["boxes"]))
    assert bool(jnp.all(tgt_out["labels"] == target["labels"]))

    # 2) Debug path: run the lane-dense aliased Pallas copy kernel once.
    #    Pass a fresh copy because the jit-wrapped kernel donates its input.
    mosaic_dbg = MosaicPallas(size=300, use_pallas_copy=True)
    img_dbg, tgt_dbg = mosaic_dbg(jnp.copy(image), target)
    jax.block_until_ready(img_dbg)
    jax.block_until_ready(tgt_dbg["boxes"])
    assert img_dbg.shape == image.shape and img_dbg.dtype == image.dtype
    assert bool(jnp.all(img_dbg == image))
    assert bool(jnp.all(tgt_dbg["boxes"] == target["boxes"]))
    assert bool(jnp.all(tgt_dbg["labels"] == target["labels"]))

    print("KERNEL_OK")
</pallas_src>

<mosaic_0001>
module attributes {stable_mosaic.version = 11 : i64} {
  func.func @_copy_kernel(%arg0: i32, %arg1: memref<8x128xf32, #tpu.memory_space<vmem>>, %arg2: memref<8x128xf32, #tpu.memory_space<vmem>>) attributes {dimension_semantics = [#tpu.dimension_semantics<parallel>], iteration_bounds = array<i64: 2>, scalar_prefetch = 0 : i64, scratch_operands = 0 : i64, tpu.core_type = #tpu.core_type<tc>, window_params = [{transform_indices = @transform_0, window_bounds = array<i64: 8, 128>}, {transform_indices = @transform_1, window_bounds = array<i64: 8, 128>}]} {
    %c0 = arith.constant 0 : index
    %c0_0 = arith.constant 0 : index
    %0 = vector.load %arg1[%c0, %c0_0] : memref<8x128xf32, #tpu.memory_space<vmem>>, vector<8x128xf32>
    %c0_1 = arith.constant 0 : index
    %c0_2 = arith.constant 0 : index
    %1 = vector.load %arg2[%c0_1, %c0_2] : memref<8x128xf32, #tpu.memory_space<vmem>>, vector<8x128xf32>
    tpu.vector_store %arg2[%c0_1, %c0_2], %0 {strides = array<i32>} : memref<8x128xf32, #tpu.memory_space<vmem>>, vector<8x128xf32>,
    return
  }
  func.func @transform_0(%arg0: i32) -> (i32, i32) {
    %c0_i32 = arith.constant 0 : i32
    %c0_i32_0 = arith.constant 0 : i32
    return %arg0, %c0_i32 : i32, i32
  }
  func.func @transform_1(%arg0: i32) -> (i32, i32) {
    %c0_i32 = arith.constant 0 : i32
    %c0_i32_0 = arith.constant 0 : i32
    return %arg0, %c0_i32 : i32, i32
  }
}

</mosaic_0001>

<bundles_post_ra>
// kernel: _pallas_identity_copy.1
= control target key start
LH: loop header
LB: loop body
LE: loop exit
PB: predicated region body
PF: predicated region fallthrough
CT: control target
= control target key end

     0   :  { %s188_s6 = smov 0   ;;  %s208_s0 = inlined_call_operand.vmem [shape: f32[16,128], index: 0, kind: input, shape index: {}, may-alias: {0,1}]   ;;  %s209_s1 = inlined_call_operand.vmem [shape: f32[16,128], index: 1, kind: output, shape index: {}, may-alias: {0,1}]  }
   0x1 LB: > { %s167_s7 = sadd.s32 4294967295, %s190_s6   ;;  %p171_p0 = scmp.ge.s32.totalorder %s190_s6, 1  ;;  %s190_s6 = sphi %s188_s6, %s11_s6  }
   0x2   : > { %p86_p1 = scmp.lt.s32.totalorder %s190_s6, 3 }
   0x4   : > { %p87_p2 = pnand %p171_p0, %p86_p1 }
   0x5   : > { %p104_p3 = scmp.lt.s32.totalorder (!%p87_p2), %s167_s7, 1 }
   0x6   : > { %90 = sbr.rel (%p87_p2) target bundleno = 18 (0x12), region = 24 }
   0xd   : > { %s211_s7 = smov (!%p104_p3, %s167_s7), 1 }
   0xe   : > { %s172_s8 = sshll.u32 %s211_s7, 3 }
   0xf   : > { %s107_s11 = scalar_lea.vmem %s208_s0, %s172_s8  ;;  %s111_s14 = scalar_lea.vmem %s209_s1, %s172_s8 }
  0x10   : > { %v112_v0 = vld [vmem:[%s107_s11] sm:$0xff] }
  0x11   : > { %113 = vst [vmem:[%s111_s14] sm:$0xff] %v112_v0 }
  0x12 PF: > { %s11_s6 = sadd.s32 1, %s190_s6  }
  0x13   : > { %p8_p4 = scmp.ge.s32.totalorder %s11_s6, 4  }
  0x15   :  { %10 = sbr.rel (!%p8_p4) target bundleno = 1 (0x1), region = 54 }

</bundles_post_ra>
